<compile_context>
chip_gen: v7x
topology: tpu7x:2x2x1
jax: 0.10.0
libtpu: 0.0.40
codegen_flags: <defaults>
</compile_context>

<pallas_src>
import functools

import numpy as np

import jax
import jax.numpy as jnp
from jax.experimental import pallas as pl
from jax.experimental.pallas import tpu as pltpu

EPS = 1e-5                  # nn.InstanceNorm2d default (affine=False)
MATMUL_DTYPE = jnp.float32  # only flip to bf16 on v6e/v7x when Cp >= ~64 (pad C to 16);
                            # at small C the kernel is store/XLU-bound, bf16 just adds casts.


def residual_block_kernel(xe_ref, w1_ref, w2_ref, mext_ref, m1_ref, o_ref, y1_scr,
                          *, H, W, HALO):
    """One batch element per grid step.

    xe_ref:   (1, Cp, Lxe)  zero-padded x flattened into lanes, with a HALO-lane zero
                            halo on each side (Lxe = Lpad + 2*HALO) so every conv tap
                            is an in-bounds static lane slice.
    w*_ref:   (9, Cp, Cp)   per-tap weight matrices [ky*3+kx, c_out, c_in].
    mext_ref: (1, Ly)       1.0 on the HxW interior of the conv1 window, else 0.
    m1_ref:   (1, Lpad)     1.0 on the HxW interior of the padded image, else 0.
    o_ref:    (1, Cp, Lpad) output (wrapper crops the 1-pixel ring + channel pad).
    y1_scr:   (Cp, Ly)      VMEM scratch for relu(IN(conv1)) including its zero halo.
    """
    Hp, Wp = H + 2, W + 2
    Lpad = Hp * Wp              # flattened zero-padded image length
    SHIFT = Wp + 1              # largest |tap offset| (corner tap)
    Ly = Lpad + 2 * SHIFT       # conv1 window: padded image + SHIFT halo each side
    inv_n = 1.0 / (H * W)

    mext = mext_ref[...]        # (1, Ly)
    m1 = m1_ref[...]            # (1, Lpad)

    def conv3x3(tap_of, w_ref):
        # Nine accumulated (Cp,Cp)@(Cp,L) MXU matmuls (f32 accumulator): no 9x im2col
        # patch, taps are loaded and consumed one at a time (tight live ranges).
        acc = None
        for t in range(9):
            dy, dx = divmod(t, 3)
            off = (dy - 1) * Wp + (dx - 1)
            prod = jnp.dot(w_ref[t].astype(MATMUL_DTYPE),
                           tap_of(off).astype(MATMUL_DTYPE),
                           preferred_element_type=jnp.float32)
            acc = prod if acc is None else acc + prod
        return acc

    def norm_stats(acc, mask):
        # Two-pass masked per-channel stats (biased variance, like PyTorch IN).
        mean = jnp.sum(acc * mask, axis=1, keepdims=True) * inv_n
        cen = (acc - mean) * mask
        var = jnp.sum(cen * cen, axis=1, keepdims=True) * inv_n
        return cen, jax.lax.rsqrt(var + EPS)

    # ---- conv1 -> InstanceNorm -> ReLU over the extended window [-SHIFT, Lpad+SHIFT) --
    # Conv biases are dropped: a per-channel constant added right before
    # InstanceNorm(affine=False) cancels exactly when the mean is subtracted.
    acc1 = conv3x3(lambda off: xe_ref[0, :, HALO - SHIFT + off:
                                      HALO - SHIFT + off + Ly], w1_ref)
    cen1, is1 = norm_stats(acc1, mext)
    # cen1 is already zero outside the HxW interior, which is exactly conv2's zero
    # padding (and zero halo); relu and the positive scale keep it zero.
    y1_scr[...] = jnp.maximum(cen1, 0.0) * is1

    # ---- conv2 -> InstanceNorm -> +residual -> ReLU over all Lpad positions ----------
    acc2 = conv3x3(lambda off: y1_scr[:, SHIFT + off: SHIFT + off + Lpad], w2_ref)
    cen2, is2 = norm_stats(acc2, m1)
    residual = xe_ref[0, :, HALO:HALO + Lpad]        # zero-padded x reused as residual
    # cen2 and residual are both zero on the pad ring, so this is a single full-width,
    # lane-dense store — no offset / zero-strip masked stores.
    o_ref[0, :, :] = jnp.maximum(cen2 * is2 + residual, 0.0)


@jax.jit
def residual_block(x_nchw, w1, b1, w2, b2):
    """x: (N, C, H, W) f32; w*: (C, C, 3, 3) OIHW; b*: (C,).

    b1/b2 are accepted for interface parity but unused: a per-channel bias added right
    before InstanceNorm(affine=False) cancels exactly when the mean is subtracted.
    """
    del b1, b2
    N, C, H, W = x_nchw.shape
    Hp, Wp = H + 2, W + 2
    Lpad = Hp * Wp
    SHIFT = Wp + 1
    Ly = Lpad + 2 * SHIFT
    PADR = 3                       # extra zero rows top/bottom -> lane halo
    HALO = PADR * Wp               # >= 2*SHIFT for any W >= 1
    Lxe = Lpad + 2 * HALO
    Cp = -(-C // 8) * 8            # pad channels to the 8-sublane tile

    # ONE fused pad (channel pad + 1-pixel conv pad + 3-row halo), then flatten the
    # padded rows into the lane axis.  No second halo pad and no transposes.
    xe = jnp.pad(x_nchw, ((0, 0), (0, Cp - C), (1 + PADR, 1 + PADR), (1, 1)))
    xe = xe.reshape(N, Cp, Lxe)

    def tap_weights(w):
        # OIHW (C,C,3,3) -> (9, Cp, Cp) per-tap matrices [ky*3+kx, c_out, c_in].
        wpad = jnp.pad(w, ((0, Cp - C), (0, Cp - C), (0, 0), (0, 0)))
        return jnp.transpose(wpad, (2, 3, 0, 1)).reshape(9, Cp, Cp).astype(MATMUL_DTYPE)

    w1t = tap_weights(w1)
    w2t = tap_weights(w2)

    # Compile-time interior masks.
    m2d = np.zeros((Hp, Wp), np.float32)
    m2d[1:H + 1, 1:W + 1] = 1.0
    m1_np = m2d.reshape(1, Lpad)
    mext_np = np.zeros((1, Ly), np.float32)
    mext_np[0, SHIFT:SHIFT + Lpad] = m1_np[0]
    m1 = jnp.asarray(m1_np)
    mext = jnp.asarray(mext_np)

    # VMEM budget: double-buffered blocks + scratch + live intermediates + headroom,
    # capped at 48 MiB so we never request all of v7x's 64 MiB physical VMEM.
    # (On v5e/v6e with 128 MiB this could be raised toward ~100 MiB for large images.)
    f32b = 4
    block_bytes = 2 * f32b * (Cp * Lxe + 2 * 9 * Cp * Cp + Ly + Lpad + Cp * Lpad)
    scratch_bytes = f32b * Cp * Ly
    live_bytes = 8 * f32b * Cp * Ly
    vmem_limit = int(min(block_bytes + scratch_bytes + live_bytes + (12 << 20), 48 << 20))

    kernel = functools.partial(residual_block_kernel, H=H, W=W, HALO=HALO)
    # TODO(synk): for large images (C>=64, 256x256+) add a parallel row-tile grid axis;
    # that requires a two-pass InstanceNorm (cross-tile stats reduction), so whole-image
    # blocks per batch element are used here.
    out_pad = pl.pallas_call(
        kernel,
        out_shape=jax.ShapeDtypeStruct((N, Cp, Lpad), jnp.float32),
        grid_spec=pltpu.PrefetchScalarGridSpec(
            num_scalar_prefetch=0,
            grid=(N,),  # one batch element per step; "parallel" feeds both v7x cores
            in_specs=[
                pl.BlockSpec((1, Cp, Lxe), lambda n: (n, 0, 0)),
                pl.BlockSpec((9, Cp, Cp), lambda n: (0, 0, 0)),
                pl.BlockSpec((9, Cp, Cp), lambda n: (0, 0, 0)),
                pl.BlockSpec((1, Ly), lambda n: (0, 0)),
                pl.BlockSpec((1, Lpad), lambda n: (0, 0)),
            ],
            out_specs=pl.BlockSpec((1, Cp, Lpad), lambda n: (n, 0, 0)),
            scratch_shapes=[pltpu.VMEM((Cp, Ly), jnp.float32)],
        ),
        compiler_params=pltpu.CompilerParams(
            dimension_semantics=("parallel",),
            vmem_limit_bytes=vmem_limit,
        ),
    )(xe, w1t, w2t, mext, m1)

    # Crop the channel padding and the 1-pixel ring; result is already NCHW.
    return out_pad.reshape(N, Cp, Hp, Wp)[:, :C, 1:H + 1, 1:W + 1]


# --------------------------------- pure-JAX reference ---------------------------------
def _ref_instance_norm(x):  # (N, C, H, W)
    mean = jnp.mean(x, axis=(2, 3), keepdims=True)
    var = jnp.mean((x - mean) ** 2, axis=(2, 3), keepdims=True)
    return (x - mean) * jax.lax.rsqrt(var + EPS)


def _ref_conv(x, w, b):  # NCHW, OIHW, SAME (stride 1, k=3, pad=1)
    y = jax.lax.conv_general_dilated(
        x, w, window_strides=(1, 1), padding="SAME",
        dimension_numbers=("NCHW", "OIHW", "NCHW"))
    return y + b.reshape(1, -1, 1, 1)


def residual_block_reference(x, w1, b1, w2, b2):
    y = jnp.maximum(_ref_instance_norm(_ref_conv(x, w1, b1)), 0.0)
    y = _ref_instance_norm(_ref_conv(y, w2, b2))
    return jnp.maximum(y + x, 0.0)


if __name__ == "__main__":
    N, C, H, W = 2, 4, 16, 16
    key = jax.random.PRNGKey(0)
    kx_, kw1, kb1, kw2, kb2 = jax.random.split(key, 5)

    x = jax.random.normal(kx_, (N, C, H, W), jnp.float32)
    w1 = jax.random.normal(kw1, (C, C, 3, 3), jnp.float32) * 0.1
    b1 = jax.random.normal(kb1, (C,), jnp.float32) * 0.05
    w2 = jax.random.normal(kw2, (C, C, 3, 3), jnp.float32) * 0.1
    b2 = jax.random.normal(kb2, (C,), jnp.float32) * 0.05

    out = jax.block_until_ready(residual_block(x, w1, b1, w2, b2))

    ref = residual_block_reference(x, w1, b1, w2, b2)
    assert out.shape == (N, C, H, W)
    max_err = float(jnp.max(jnp.abs(out - ref)))
    assert jnp.allclose(out, ref, atol=1e-4, rtol=1e-4), max_err

    print("KERNEL_OK")
</pallas_src>

<mosaic_0001>
module attributes {stable_mosaic.version = 11 : i64} {
  func.func @residual_block_kernel(%arg0: i32, %arg1: memref<1x8x432xf32, #tpu.memory_space<vmem>>, %arg2: memref<9x8x8xf32, #tpu.memory_space<vmem>>, %arg3: memref<9x8x8xf32, #tpu.memory_space<vmem>>, %arg4: memref<1x362xf32, #tpu.memory_space<vmem>>, %arg5: memref<1x324xf32, #tpu.memory_space<vmem>>, %arg6: memref<1x8x324xf32, #tpu.memory_space<vmem>>, %arg7: memref<8x362xf32, #tpu.memory_space<vmem>>) attributes {dimension_semantics = [#tpu.dimension_semantics<parallel>], iteration_bounds = array<i64: 2>, scalar_prefetch = 0 : i64, scratch_operands = 1 : i64, tpu.core_type = #tpu.core_type<tc>, window_params = [{transform_indices = @transform_0, window_bounds = array<i64: 1, 8, 432>}, {pipeline_mode = #tpu.pipeline_mode<synchronous>, transform_indices = @transform_1, window_bounds = array<i64: 9, 8, 8>}, {pipeline_mode = #tpu.pipeline_mode<synchronous>, transform_indices = @transform_2, window_bounds = array<i64: 9, 8, 8>}, {pipeline_mode = #tpu.pipeline_mode<synchronous>, transform_indices = @transform_3, window_bounds = array<i64: 1, 362>}, {pipeline_mode = #tpu.pipeline_mode<synchronous>, transform_indices = @transform_4, window_bounds = array<i64: 1, 324>}, {transform_indices = @transform_5, window_bounds = array<i64: 1, 8, 324>}]} {
    %c0 = arith.constant 0 : index
    %c0_0 = arith.constant 0 : index
    %0 = vector.load %arg4[%c0, %c0_0] : memref<1x362xf32, #tpu.memory_space<vmem>>, vector<1x362xf32>
    %c0_1 = arith.constant 0 : index
    %c0_2 = arith.constant 0 : index
    %1 = vector.load %arg5[%c0_1, %c0_2] : memref<1x324xf32, #tpu.memory_space<vmem>>, vector<1x324xf32>
    %c0_3 = arith.constant 0 : index
    %c0_4 = arith.constant 0 : index
    %c0_5 = arith.constant 0 : index
    %2 = vector.load %arg2[%c0_3, %c0_4, %c0_5] : memref<9x8x8xf32, #tpu.memory_space<vmem>>, vector<1x8x8xf32>
    %3 = vector.shape_cast %2 : vector<1x8x8xf32> to vector<8x8xf32>
    %c0_6 = arith.constant 0 : index
    %c0_7 = arith.constant 0 : index
    %c16 = arith.constant 16 : index
    %4 = vector.load %arg1[%c0_6, %c0_7, %c16] : memref<1x8x432xf32, #tpu.memory_space<vmem>>, vector<1x8x362xf32>
    %5 = vector.shape_cast %4 : vector<1x8x362xf32> to vector<8x362xf32>
    %cst = arith.constant dense<0.000000e+00> : vector<8x362xf32>
    %6 = tpu.matmul %3, %5, %cst {dimension_numbers = #tpu.dot_dimension_numbers<[1], [0], [0], [1], [0, 0, 1, 1], [], []>} : vector<8x8xf32>, vector<8x362xf32>, vector<8x362xf32> -> vector<8x362xf32>
    %c1 = arith.constant 1 : index
    %c0_8 = arith.constant 0 : index
    %c0_9 = arith.constant 0 : index
    %7 = vector.load %arg2[%c1, %c0_8, %c0_9] : memref<9x8x8xf32, #tpu.memory_space<vmem>>, vector<1x8x8xf32>
    %8 = vector.shape_cast %7 : vector<1x8x8xf32> to vector<8x8xf32>
    %c0_10 = arith.constant 0 : index
    %c0_11 = arith.constant 0 : index
    %c17 = arith.constant 17 : index
    %9 = vector.load %arg1[%c0_10, %c0_11, %c17] : memref<1x8x432xf32, #tpu.memory_space<vmem>>, vector<1x8x362xf32>
    %10 = vector.shape_cast %9 : vector<1x8x362xf32> to vector<8x362xf32>
    %cst_12 = arith.constant dense<0.000000e+00> : vector<8x362xf32>
    %11 = tpu.matmul %8, %10, %cst_12 {dimension_numbers = #tpu.dot_dimension_numbers<[1], [0], [0], [1], [0, 0, 1, 1], [], []>} : vector<8x8xf32>, vector<8x362xf32>, vector<8x362xf32> -> vector<8x362xf32>
    %12 = arith.addf %6, %11 : vector<8x362xf32>
    %c2 = arith.constant 2 : index
    %c0_13 = arith.constant 0 : index
    %c0_14 = arith.constant 0 : index
    %13 = vector.load %arg2[%c2, %c0_13, %c0_14] : memref<9x8x8xf32, #tpu.memory_space<vmem>>, vector<1x8x8xf32>
    %14 = vector.shape_cast %13 : vector<1x8x8xf32> to vector<8x8xf32>
    %c0_15 = arith.constant 0 : index
    %c0_16 = arith.constant 0 : index
    %c18 = arith.constant 18 : index
    %15 = vector.load %arg1[%c0_15, %c0_16, %c18] : memref<1x8x432xf32, #tpu.memory_space<vmem>>, vector<1x8x362xf32>
    %16 = vector.shape_cast %15 : vector<1x8x362xf32> to vector<8x362xf32>
    %cst_17 = arith.constant dense<0.000000e+00> : vector<8x362xf32>
    %17 = tpu.matmul %14, %16, %cst_17 {dimension_numbers = #tpu.dot_dimension_numbers<[1], [0], [0], [1], [0, 0, 1, 1], [], []>} : vector<8x8xf32>, vector<8x362xf32>, vector<8x362xf32> -> vector<8x362xf32>
    %18 = arith.addf %12, %17 : vector<8x362xf32>
    %c3 = arith.constant 3 : index
    %c0_18 = arith.constant 0 : index
    %c0_19 = arith.constant 0 : index
    %19 = vector.load %arg2[%c3, %c0_18, %c0_19] : memref<9x8x8xf32, #tpu.memory_space<vmem>>, vector<1x8x8xf32>
    %20 = vector.shape_cast %19 : vector<1x8x8xf32> to vector<8x8xf32>
    %c0_20 = arith.constant 0 : index
    %c0_21 = arith.constant 0 : index
    %c34 = arith.constant 34 : index
    %21 = vector.load %arg1[%c0_20, %c0_21, %c34] : memref<1x8x432xf32, #tpu.memory_space<vmem>>, vector<1x8x362xf32>
    %22 = vector.shape_cast %21 : vector<1x8x362xf32> to vector<8x362xf32>
    %cst_22 = arith.constant dense<0.000000e+00> : vector<8x362xf32>
    %23 = tpu.matmul %20, %22, %cst_22 {dimension_numbers = #tpu.dot_dimension_numbers<[1], [0], [0], [1], [0, 0, 1, 1], [], []>} : vector<8x8xf32>, vector<8x362xf32>, vector<8x362xf32> -> vector<8x362xf32>
    %24 = arith.addf %18, %23 : vector<8x362xf32>
    %c4 = arith.constant 4 : index
    %c0_23 = arith.constant 0 : index
    %c0_24 = arith.constant 0 : index
    %25 = vector.load %arg2[%c4, %c0_23, %c0_24] : memref<9x8x8xf32, #tpu.memory_space<vmem>>, vector<1x8x8xf32>
    %26 = vector.shape_cast %25 : vector<1x8x8xf32> to vector<8x8xf32>
    %c0_25 = arith.constant 0 : index
    %c0_26 = arith.constant 0 : index
    %c35 = arith.constant 35 : index
    %27 = vector.load %arg1[%c0_25, %c0_26, %c35] : memref<1x8x432xf32, #tpu.memory_space<vmem>>, vector<1x8x362xf32>
    %28 = vector.shape_cast %27 : vector<1x8x362xf32> to vector<8x362xf32>
    %cst_27 = arith.constant dense<0.000000e+00> : vector<8x362xf32>
    %29 = tpu.matmul %26, %28, %cst_27 {dimension_numbers = #tpu.dot_dimension_numbers<[1], [0], [0], [1], [0, 0, 1, 1], [], []>} : vector<8x8xf32>, vector<8x362xf32>, vector<8x362xf32> -> vector<8x362xf32>
    %30 = arith.addf %24, %29 : vector<8x362xf32>
    %c5 = arith.constant 5 : index
    %c0_28 = arith.constant 0 : index
    %c0_29 = arith.constant 0 : index
    %31 = vector.load %arg2[%c5, %c0_28, %c0_29] : memref<9x8x8xf32, #tpu.memory_space<vmem>>, vector<1x8x8xf32>
    %32 = vector.shape_cast %31 : vector<1x8x8xf32> to vector<8x8xf32>
    %c0_30 = arith.constant 0 : index
    %c0_31 = arith.constant 0 : index
    %c36 = arith.constant 36 : index
    %33 = vector.load %arg1[%c0_30, %c0_31, %c36] : memref<1x8x432xf32, #tpu.memory_space<vmem>>, vector<1x8x362xf32>
    %34 = vector.shape_cast %33 : vector<1x8x362xf32> to vector<8x362xf32>
    %cst_32 = arith.constant dense<0.000000e+00> : vector<8x362xf32>
    %35 = tpu.matmul %32, %34, %cst_32 {dimension_numbers = #tpu.dot_dimension_numbers<[1], [0], [0], [1], [0, 0, 1, 1], [], []>} : vector<8x8xf32>, vector<8x362xf32>, vector<8x362xf32> -> vector<8x362xf32>
    %36 = arith.addf %30, %35 : vector<8x362xf32>
    %c6 = arith.constant 6 : index
    %c0_33 = arith.constant 0 : index
    %c0_34 = arith.constant 0 : index
    %37 = vector.load %arg2[%c6, %c0_33, %c0_34] : memref<9x8x8xf32, #tpu.memory_space<vmem>>, vector<1x8x8xf32>
    %38 = vector.shape_cast %37 : vector<1x8x8xf32> to vector<8x8xf32>
    %c0_35 = arith.constant 0 : index
    %c0_36 = arith.constant 0 : index
    %c52 = arith.constant 52 : index
    %39 = vector.load %arg1[%c0_35, %c0_36, %c52] : memref<1x8x432xf32, #tpu.memory_space<vmem>>, vector<1x8x362xf32>
    %40 = vector.shape_cast %39 : vector<1x8x362xf32> to vector<8x362xf32>
    %cst_37 = arith.constant dense<0.000000e+00> : vector<8x362xf32>
    %41 = tpu.matmul %38, %40, %cst_37 {dimension_numbers = #tpu.dot_dimension_numbers<[1], [0], [0], [1], [0, 0, 1, 1], [], []>} : vector<8x8xf32>, vector<8x362xf32>, vector<8x362xf32> -> vector<8x362xf32>
    %42 = arith.addf %36, %41 : vector<8x362xf32>
    %c7 = arith.constant 7 : index
    %c0_38 = arith.constant 0 : index
    %c0_39 = arith.constant 0 : index
    %43 = vector.load %arg2[%c7, %c0_38, %c0_39] : memref<9x8x8xf32, #tpu.memory_space<vmem>>, vector<1x8x8xf32>
    %44 = vector.shape_cast %43 : vector<1x8x8xf32> to vector<8x8xf32>
    %c0_40 = arith.constant 0 : index
    %c0_41 = arith.constant 0 : index
    %c53 = arith.constant 53 : index
    %45 = vector.load %arg1[%c0_40, %c0_41, %c53] : memref<1x8x432xf32, #tpu.memory_space<vmem>>, vector<1x8x362xf32>
    %46 = vector.shape_cast %45 : vector<1x8x362xf32> to vector<8x362xf32>
    %cst_42 = arith.constant dense<0.000000e+00> : vector<8x362xf32>
    %47 = tpu.matmul %44, %46, %cst_42 {dimension_numbers = #tpu.dot_dimension_numbers<[1], [0], [0], [1], [0, 0, 1, 1], [], []>} : vector<8x8xf32>, vector<8x362xf32>, vector<8x362xf32> -> vector<8x362xf32>
    %48 = arith.addf %42, %47 : vector<8x362xf32>
    %c8 = arith.constant 8 : index
    %c0_43 = arith.constant 0 : index
    %c0_44 = arith.constant 0 : index
    %49 = vector.load %arg2[%c8, %c0_43, %c0_44] : memref<9x8x8xf32, #tpu.memory_space<vmem>>, vector<1x8x8xf32>
    %50 = vector.shape_cast %49 : vector<1x8x8xf32> to vector<8x8xf32>
    %c0_45 = arith.constant 0 : index
    %c0_46 = arith.constant 0 : index
    %c54 = arith.constant 54 : index
    %51 = vector.load %arg1[%c0_45, %c0_46, %c54] : memref<1x8x432xf32, #tpu.memory_space<vmem>>, vector<1x8x362xf32>
    %52 = vector.shape_cast %51 : vector<1x8x362xf32> to vector<8x362xf32>
    %cst_47 = arith.constant dense<0.000000e+00> : vector<8x362xf32>
    %53 = tpu.matmul %50, %52, %cst_47 {dimension_numbers = #tpu.dot_dimension_numbers<[1], [0], [0], [1], [0, 0, 1, 1], [], []>} : vector<8x8xf32>, vector<8x362xf32>, vector<8x362xf32> -> vector<8x362xf32>
    %54 = arith.addf %48, %53 : vector<8x362xf32>
    %55 = vector.broadcast %0 : vector<1x362xf32> to vector<8x362xf32>
    %56 = arith.mulf %54, %55 : vector<8x362xf32>
    %cst_48 = arith.constant dense<0.000000e+00> : vector<8xf32>
    %57 = vector.multi_reduction <add>, %56, %cst_48 [1] : vector<8x362xf32> to vector<8xf32>
    %58 = vector.shape_cast %57 : vector<8xf32> to vector<8x1xf32>
    %cst_49 = arith.constant 3.906250e-03 : f32
    %59 = vector.broadcast %cst_49 : f32 to vector<8x1xf32>
    %60 = arith.mulf %58, %59 : vector<8x1xf32>
    %61 = vector.broadcast %60 : vector<8x1xf32> to vector<8x362xf32>
    %62 = arith.subf %54, %61 : vector<8x362xf32>
    %63 = vector.broadcast %0 : vector<1x362xf32> to vector<8x362xf32>
    %64 = arith.mulf %62, %63 : vector<8x362xf32>
    %65 = arith.mulf %64, %64 : vector<8x362xf32>
    %cst_50 = arith.constant dense<0.000000e+00> : vector<8xf32>
    %66 = vector.multi_reduction <add>, %65, %cst_50 [1] : vector<8x362xf32> to vector<8xf32>
    %67 = vector.shape_cast %66 : vector<8xf32> to vector<8x1xf32>
    %cst_51 = arith.constant 3.906250e-03 : f32
    %68 = vector.broadcast %cst_51 : f32 to vector<8x1xf32>
    %69 = arith.mulf %67, %68 : vector<8x1xf32>
    %cst_52 = arith.constant 9.99999974E-6 : f32
    %70 = vector.broadcast %cst_52 : f32 to vector<8x1xf32>
    %71 = arith.addf %69, %70 : vector<8x1xf32>
    %72 = math.rsqrt %71 : vector<8x1xf32>
    %cst_53 = arith.constant 0.000000e+00 : f32
    %73 = vector.broadcast %cst_53 : f32 to vector<8x362xf32>
    %74 = arith.maximumf %64, %73 : vector<8x362xf32>
    %75 = vector.broadcast %72 : vector<8x1xf32> to vector<8x362xf32>
    %76 = arith.mulf %74, %75 : vector<8x362xf32>
    %c0_54 = arith.constant 0 : index
    %c0_55 = arith.constant 0 : index
    %77 = vector.load %arg7[%c0_54, %c0_55] : memref<8x362xf32, #tpu.memory_space<vmem>>, vector<8x362xf32>
    tpu.vector_store %arg7[%c0_54, %c0_55], %76 {strides = array<i32>} : memref<8x362xf32, #tpu.memory_space<vmem>>, vector<8x362xf32>,
    %c0_56 = arith.constant 0 : index
    %c0_57 = arith.constant 0 : index
    %c0_58 = arith.constant 0 : index
    %78 = vector.load %arg3[%c0_56, %c0_57, %c0_58] : memref<9x8x8xf32, #tpu.memory_space<vmem>>, vector<1x8x8xf32>
    %79 = vector.shape_cast %78 : vector<1x8x8xf32> to vector<8x8xf32>
    %c0_59 = arith.constant 0 : index
    %c0_60 = arith.constant 0 : index
    %80 = vector.load %arg7[%c0_59, %c0_60] : memref<8x362xf32, #tpu.memory_space<vmem>>, vector<8x324xf32>
    %cst_61 = arith.constant dense<0.000000e+00> : vector<8x324xf32>
    %81 = tpu.matmul %79, %80, %cst_61 {dimension_numbers = #tpu.dot_dimension_numbers<[1], [0], [0], [1], [0, 0, 1, 1], [], []>} : vector<8x8xf32>, vector<8x324xf32>, vector<8x324xf32> -> vector<8x324xf32>
    %c1_62 = arith.constant 1 : index
    %c0_63 = arith.constant 0 : index
    %c0_64 = arith.constant 0 : index
    %82 = vector.load %arg3[%c1_62, %c0_63, %c0_64] : memref<9x8x8xf32, #tpu.memory_space<vmem>>, vector<1x8x8xf32>
    %83 = vector.shape_cast %82 : vector<1x8x8xf32> to vector<8x8xf32>
    %c0_65 = arith.constant 0 : index
    %c1_66 = arith.constant 1 : index
    %84 = vector.load %arg7[%c0_65, %c1_66] : memref<8x362xf32, #tpu.memory_space<vmem>>, vector<8x324xf32>
    %cst_67 = arith.constant dense<0.000000e+00> : vector<8x324xf32>
    %85 = tpu.matmul %83, %84, %cst_67 {dimension_numbers = #tpu.dot_dimension_numbers<[1], [0], [0], [1], [0, 0, 1, 1], [], []>} : vector<8x8xf32>, vector<8x324xf32>, vector<8x324xf32> -> vector<8x324xf32>
    %86 = arith.addf %81, %85 : vector<8x324xf32>
    %c2_68 = arith.constant 2 : index
    %c0_69 = arith.constant 0 : index
    %c0_70 = arith.constant 0 : index
    %87 = vector.load %arg3[%c2_68, %c0_69, %c0_70] : memref<9x8x8xf32, #tpu.memory_space<vmem>>, vector<1x8x8xf32>
    %88 = vector.shape_cast %87 : vector<1x8x8xf32> to vector<8x8xf32>
    %c0_71 = arith.constant 0 : index
    %c2_72 = arith.constant 2 : index
    %89 = vector.load %arg7[%c0_71, %c2_72] : memref<8x362xf32, #tpu.memory_space<vmem>>, vector<8x324xf32>
    %cst_73 = arith.constant dense<0.000000e+00> : vector<8x324xf32>
    %90 = tpu.matmul %88, %89, %cst_73 {dimension_numbers = #tpu.dot_dimension_numbers<[1], [0], [0], [1], [0, 0, 1, 1], [], []>} : vector<8x8xf32>, vector<8x324xf32>, vector<8x324xf32> -> vector<8x324xf32>
    %91 = arith.addf %86, %90 : vector<8x324xf32>
    %c3_74 = arith.constant 3 : index
    %c0_75 = arith.constant 0 : index
    %c0_76 = arith.constant 0 : index
    %92 = vector.load %arg3[%c3_74, %c0_75, %c0_76] : memref<9x8x8xf32, #tpu.memory_space<vmem>>, vector<1x8x8xf32>
    %93 = vector.shape_cast %92 : vector<1x8x8xf32> to vector<8x8xf32>
    %c0_77 = arith.constant 0 : index
    %c18_78 = arith.constant 18 : index
    %94 = vector.load %arg7[%c0_77, %c18_78] : memref<8x362xf32, #tpu.memory_space<vmem>>, vector<8x324xf32>
    %cst_79 = arith.constant dense<0.000000e+00> : vector<8x324xf32>
    %95 = tpu.matmul %93, %94, %cst_79 {dimension_numbers = #tpu.dot_dimension_numbers<[1], [0], [0], [1], [0, 0, 1, 1], [], []>} : vector<8x8xf32>, vector<8x324xf32>, vector<8x324xf32> -> vector<8x324xf32>
    %96 = arith.addf %91, %95 : vector<8x324xf32>
    %c4_80 = arith.constant 4 : index
    %c0_81 = arith.constant 0 : index
    %c0_82 = arith.constant 0 : index
    %97 = vector.load %arg3[%c4_80, %c0_81, %c0_82] : memref<9x8x8xf32, #tpu.memory_space<vmem>>, vector<1x8x8xf32>
    %98 = vector.shape_cast %97 : vector<1x8x8xf32> to vector<8x8xf32>
    %c0_83 = arith.constant 0 : index
    %c19 = arith.constant 19 : index
    %99 = vector.load %arg7[%c0_83, %c19] : memref<8x362xf32, #tpu.memory_space<vmem>>, vector<8x324xf32>
    %cst_84 = arith.constant dense<0.000000e+00> : vector<8x324xf32>
    %100 = tpu.matmul %98, %99, %cst_84 {dimension_numbers = #tpu.dot_dimension_numbers<[1], [0], [0], [1], [0, 0, 1, 1], [], []>} : vector<8x8xf32>, vector<8x324xf32>, vector<8x324xf32> -> vector<8x324xf32>
    %101 = arith.addf %96, %100 : vector<8x324xf32>
    %c5_85 = arith.constant 5 : index
    %c0_86 = arith.constant 0 : index
    %c0_87 = arith.constant 0 : index
    %102 = vector.load %arg3[%c5_85, %c0_86, %c0_87] : memref<9x8x8xf32, #tpu.memory_space<vmem>>, vector<1x8x8xf32>
    %103 = vector.shape_cast %102 : vector<1x8x8xf32> to vector<8x8xf32>
    %c0_88 = arith.constant 0 : index
    %c20 = arith.constant 20 : index
    %104 = vector.load %arg7[%c0_88, %c20] : memref<8x362xf32, #tpu.memory_space<vmem>>, vector<8x324xf32>
    %cst_89 = arith.constant dense<0.000000e+00> : vector<8x324xf32>
    %105 = tpu.matmul %103, %104, %cst_89 {dimension_numbers = #tpu.dot_dimension_numbers<[1], [0], [0], [1], [0, 0, 1, 1], [], []>} : vector<8x8xf32>, vector<8x324xf32>, vector<8x324xf32> -> vector<8x324xf32>
    %106 = arith.addf %101, %105 : vector<8x324xf32>
    %c6_90 = arith.constant 6 : index
    %c0_91 = arith.constant 0 : index
    %c0_92 = arith.constant 0 : index
    %107 = vector.load %arg3[%c6_90, %c0_91, %c0_92] : memref<9x8x8xf32, #tpu.memory_space<vmem>>, vector<1x8x8xf32>
    %108 = vector.shape_cast %107 : vector<1x8x8xf32> to vector<8x8xf32>
    %c0_93 = arith.constant 0 : index
    %c36_94 = arith.constant 36 : index
    %109 = vector.load %arg7[%c0_93, %c36_94] : memref<8x362xf32, #tpu.memory_space<vmem>>, vector<8x324xf32>
    %cst_95 = arith.constant dense<0.000000e+00> : vector<8x324xf32>
    %110 = tpu.matmul %108, %109, %cst_95 {dimension_numbers = #tpu.dot_dimension_numbers<[1], [0], [0], [1], [0, 0, 1, 1], [], []>} : vector<8x8xf32>, vector<8x324xf32>, vector<8x324xf32> -> vector<8x324xf32>
    %111 = arith.addf %106, %110 : vector<8x324xf32>
    %c7_96 = arith.constant 7 : index
    %c0_97 = arith.constant 0 : index
    %c0_98 = arith.constant 0 : index
    %112 = vector.load %arg3[%c7_96, %c0_97, %c0_98] : memref<9x8x8xf32, #tpu.memory_space<vmem>>, vector<1x8x8xf32>
    %113 = vector.shape_cast %112 : vector<1x8x8xf32> to vector<8x8xf32>
    %c0_99 = arith.constant 0 : index
    %c37 = arith.constant 37 : index
    %114 = vector.load %arg7[%c0_99, %c37] : memref<8x362xf32, #tpu.memory_space<vmem>>, vector<8x324xf32>
    %cst_100 = arith.constant dense<0.000000e+00> : vector<8x324xf32>
    %115 = tpu.matmul %113, %114, %cst_100 {dimension_numbers = #tpu.dot_dimension_numbers<[1], [0], [0], [1], [0, 0, 1, 1], [], []>} : vector<8x8xf32>, vector<8x324xf32>, vector<8x324xf32> -> vector<8x324xf32>
    %116 = arith.addf %111, %115 : vector<8x324xf32>
    %c8_101 = arith.constant 8 : index
    %c0_102 = arith.constant 0 : index
    %c0_103 = arith.constant 0 : index
    %117 = vector.load %arg3[%c8_101, %c0_102, %c0_103] : memref<9x8x8xf32, #tpu.memory_space<vmem>>, vector<1x8x8xf32>
    %118 = vector.shape_cast %117 : vector<1x8x8xf32> to vector<8x8xf32>
    %c0_104 = arith.constant 0 : index
    %c38 = arith.constant 38 : index
    %119 = vector.load %arg7[%c0_104, %c38] : memref<8x362xf32, #tpu.memory_space<vmem>>, vector<8x324xf32>
    %cst_105 = arith.constant dense<0.000000e+00> : vector<8x324xf32>
    %120 = tpu.matmul %118, %119, %cst_105 {dimension_numbers = #tpu.dot_dimension_numbers<[1], [0], [0], [1], [0, 0, 1, 1], [], []>} : vector<8x8xf32>, vector<8x324xf32>, vector<8x324xf32> -> vector<8x324xf32>
    %121 = arith.addf %116, %120 : vector<8x324xf32>
    %122 = vector.broadcast %1 : vector<1x324xf32> to vector<8x324xf32>
    %123 = arith.mulf %121, %122 : vector<8x324xf32>
    %cst_106 = arith.constant dense<0.000000e+00> : vector<8xf32>
    %124 = vector.multi_reduction <add>, %123, %cst_106 [1] : vector<8x324xf32> to vector<8xf32>
    %125 = vector.shape_cast %124 : vector<8xf32> to vector<8x1xf32>
    %cst_107 = arith.constant 3.906250e-03 : f32
    %126 = vector.broadcast %cst_107 : f32 to vector<8x1xf32>
    %127 = arith.mulf %125, %126 : vector<8x1xf32>
    %128 = vector.broadcast %127 : vector<8x1xf32> to vector<8x324xf32>
    %129 = arith.subf %121, %128 : vector<8x324xf32>
    %130 = vector.broadcast %1 : vector<1x324xf32> to vector<8x324xf32>
    %131 = arith.mulf %129, %130 : vector<8x324xf32>
    %132 = arith.mulf %131, %131 : vector<8x324xf32>
    %cst_108 = arith.constant dense<0.000000e+00> : vector<8xf32>
    %133 = vector.multi_reduction <add>, %132, %cst_108 [1] : vector<8x324xf32> to vector<8xf32>
    %134 = vector.shape_cast %133 : vector<8xf32> to vector<8x1xf32>
    %cst_109 = arith.constant 3.906250e-03 : f32
    %135 = vector.broadcast %cst_109 : f32 to vector<8x1xf32>
    %136 = arith.mulf %134, %135 : vector<8x1xf32>
    %cst_110 = arith.constant 9.99999974E-6 : f32
    %137 = vector.broadcast %cst_110 : f32 to vector<8x1xf32>
    %138 = arith.addf %136, %137 : vector<8x1xf32>
    %139 = math.rsqrt %138 : vector<8x1xf32>
    %c0_111 = arith.constant 0 : index
    %c0_112 = arith.constant 0 : index
    %c54_113 = arith.constant 54 : index
    %140 = vector.load %arg1[%c0_111, %c0_112, %c54_113] : memref<1x8x432xf32, #tpu.memory_space<vmem>>, vector<1x8x324xf32>
    %141 = vector.shape_cast %140 : vector<1x8x324xf32> to vector<8x324xf32>
    %142 = vector.broadcast %139 : vector<8x1xf32> to vector<8x324xf32>
    %143 = arith.mulf %131, %142 : vector<8x324xf32>
    %144 = arith.addf %143, %141 : vector<8x324xf32>
    %cst_114 = arith.constant 0.000000e+00 : f32
    %145 = vector.broadcast %cst_114 : f32 to vector<8x324xf32>
    %146 = arith.maximumf %144, %145 : vector<8x324xf32>
    %c0_115 = arith.constant 0 : index
    %c0_116 = arith.constant 0 : index
    %c0_117 = arith.constant 0 : index
    %147 = vector.load %arg6[%c0_115, %c0_116, %c0_117] : memref<1x8x324xf32, #tpu.memory_space<vmem>>, vector<1x8x324xf32>
    %148 = vector.shape_cast %147 : vector<1x8x324xf32> to vector<8x324xf32>
    %149 = vector.shape_cast %146 : vector<8x324xf32> to vector<1x8x324xf32>
    tpu.vector_store %arg6[%c0_115, %c0_116, %c0_117], %149 {strides = array<i32>} : memref<1x8x324xf32, #tpu.memory_space<vmem>>, vector<1x8x324xf32>,
    return
  }
  func.func @transform_0(%arg0: i32) -> (i32, i32, i32) {
    %c0_i32 = arith.constant 0 : i32
    %c0_i32_0 = arith.constant 0 : i32
    %c0_i32_1 = arith.constant 0 : i32
    return %arg0, %c0_i32, %c0_i32_0 : i32, i32, i32
  }
  func.func @transform_1(%arg0: i32) -> (i32, i32, i32) {
    %c0_i32 = arith.constant 0 : i32
    %c0_i32_0 = arith.constant 0 : i32
    %c0_i32_1 = arith.constant 0 : i32
    %c0_i32_2 = arith.constant 0 : i32
    return %c0_i32, %c0_i32_0, %c0_i32_1 : i32, i32, i32
  }
  func.func @transform_2(%arg0: i32) -> (i32, i32, i32) {
    %c0_i32 = arith.constant 0 : i32
    %c0_i32_0 = arith.constant 0 : i32
    %c0_i32_1 = arith.constant 0 : i32
    %c0_i32_2 = arith.constant 0 : i32
    return %c0_i32, %c0_i32_0, %c0_i32_1 : i32, i32, i32
  }
  func.func @transform_3(%arg0: i32) -> (i32, i32) {
    %c0_i32 = arith.constant 0 : i32
    %c0_i32_0 = arith.constant 0 : i32
    %c0_i32_1 = arith.constant 0 : i32
    return %c0_i32, %c0_i32_0 : i32, i32
  }
  func.func @transform_4(%arg0: i32) -> (i32, i32) {
    %c0_i32 = arith.constant 0 : i32
    %c0_i32_0 = arith.constant 0 : i32
    %c0_i32_1 = arith.constant 0 : i32
    return %c0_i32, %c0_i32_0 : i32, i32
  }
  func.func @transform_5(%arg0: i32) -> (i32, i32, i32) {
    %c0_i32 = arith.constant 0 : i32
    %c0_i32_0 = arith.constant 0 : i32
    %c0_i32_1 = arith.constant 0 : i32
    return %arg0, %c0_i32, %c0_i32_0 : i32, i32, i32
  }
}

</mosaic_0001>

<bundles_post_ra>
// kernel: residual_block.1
= control target key start
LH: loop header
LB: loop body
LE: loop exit
PB: predicated region body
PF: predicated region fallthrough
CT: control target
= control target key end

     0   :  { %s3653_s18 = smov 0   ;;  %s3939_s0 = inlined_call_operand.vmem [shape: f32[2,8,432], index: 0, kind: input, shape index: {}]   ;;  %s3940_s1 = inlined_call_operand.vmem [shape: f32[9,8,8], index: 1, kind: input, shape index: {}]   ;;  %s3941_s2 = inlined_call_operand.vmem [shape: f32[9,8,8], index: 2, kind: input, shape index: {}]   ;;  %s3942_s3 = inlined_call_operand.vmem [shape: f32[1,362], index: 3, kind: input, shape index: {}]   ;;  %s3943_s4 = inlined_call_operand.vmem [shape: f32[1,324], index: 4, kind: input, shape index: {}]   ;;  %s3944_s5 = inlined_call_operand.vmem [shape: f32[2,8,324], index: 5, kind: output, shape index: {}]  }
   0x1 LB: > { %s3315_s19 = sadd.s32 4294967295, %s3604_s18   ;;  %p3319_p0 = scmp.ge.s32.totalorder %s3604_s18, 1  ;;  %s3604_s18 = sphi %s3653_s18, %s15_s18  }
   0x2   : > { %p187_p1 = scmp.lt.s32.totalorder %s3604_s18, 3 }
   0x4   : > { %p188_p2 = pnand %p3319_p0, %p187_p1 }
   0x5   : > { %p215_p3 = scmp.lt.s32.totalorder (!%p188_p2), %s3315_s19, 1  ;;  %v3606_v0 = vmov (!%p188_p2), 0.0   ;;  %vm3607_vm0 = vmmov (!%p188_p2), 0   ;;  %s3608_s24 = smov (!%p188_p2), 111   ;;  %vm242_vm1 = vcmask (!%p188_p2), 908288   ;;  %v3323_v7 = vld [vmem:[%s3940_s1 + $0x8] sm:$0xff] (!%p188_p2) }
   0x6   : > { %191 = sbr.rel (%p188_p2) target bundleno = 1466 (0x5ba), region = 40  ;;  %3414 = vmatprep.subr.mxu1 (!%p188_p2), %v3606_v0  ;;  %3416 = vmatprep.mubr.msk.f32.mxu1 (!%p188_p2), %vm3607_vm0, %v3606_v0  ;;  %s3609_s25 = smov (!%p188_p2), 112   ;;  %vm248_vm2 = vcmask (!%p188_p2), 64512   ;;  %vm399_vm3 = vcmask (!%p188_p2), 916480   ;;  %vm557_vm4 = vcmask (!%p188_p2), 900096   ;;  %v227_v16 = vld [vmem:[%s3940_s1] sm:$0xff] (!%p188_p2) }
   0x7   : > { %316 = vmatprep.mubr.f32.mxu0 (!%p188_p2), %v3606_v0  ;;  %s3610_s26 = smov (!%p188_p2), 110   ;;  %s3611_s27 = smov (!%p188_p2), 94   ;;  %vm728_vm5 = vcmask (!%p188_p2), 769024   ;;  %v3328_v23 = vld [vmem:[%s3940_s1 + $0x10] sm:$0xff] (!%p188_p2)  ;;  %vm892_vm6 = vcmask (!%p188_p2), 760832   ;;  %v3331_v31 = vld [vmem:[%s3940_s1 + $0x18] sm:$0xff] (!%p188_p2) }
   0x8   : > { %s3612_s28 = smov (!%p188_p2), 93   ;;  %s3613_s29 = smov (!%p188_p2), 92   ;;  %vm1056_vm7 = vcmask (!%p188_p2), 752640   ;;  %v3334_v39 = vld [vmem:[%s3940_s1 + $0x20] sm:$0xff] (!%p188_p2)  ;;  %vm1220_vm8 = vcmask (!%p188_p2), 621568   ;;  %v3337_v47 = vld [vmem:[%s3940_s1 + $0x28] sm:$0xff] (!%p188_p2) }
   0x9   : > { %s3614_s30 = smov (!%p188_p2), 76   ;;  %s3615_s6 = smov (!%p188_p2), 75   ;;  %vm1384_vm9 = vcmask (!%p188_p2), 613376   ;;  %v3340_v55 = vld [vmem:[%s3940_s1 + $0x30] sm:$0xff] (!%p188_p2)  ;;  %vm1548_vm10 = vcmask (!%p188_p2), 605184   ;;  %v3343_v63 = vld [vmem:[%s3940_s1 + $0x38] sm:$0xff] (!%p188_p2) }
   0xa   : > { %s3616_s7 = smov (!%p188_p2), 74   ;;  %vm1722_vm11 = vcmask (!%p188_p2), 867328   ;;  %s3617_s8 = smov (!%p188_p2), 127   ;;  %vm1769_vm12 = vcmask (!%p188_p2), 1039360   ;;  %vm2071_vm13 = vcmask (!%p188_p2), 1031168   ;;  %vm2392_vm14 = vcmask (!%p188_p2), 891904  }
   0xb   : > { %s3618_s9 = smov (!%p188_p2), 126   ;;  %s3619_s10 = smov (!%p188_p2), 109   ;;  %vm2553_vm15 = vcmask (!%p188_p2), 883712  }
   0xc   : > { %s3620_s11 = smov (!%p188_p2), 108   ;;  %s3621_s12 = smov (!%p188_p2), 91  }
   0xd   : > { %s3946_s19 = smov (!%p215_p3, %s3315_s19), 1  ;;  %s3622_s13 = smov 90  }
   0xe   : > { %s3377_s20 = sshll.u32 %s3946_s19, 5 }
   0xf   : > { %s219_s23 = scalar_lea.vmem %s3939_s0, %s3377_s20 }
  0x10   : > { %v3671_v1 = vld [vmem:[%s219_s23 + $0x8] sm:$0xff]  ;;  %v3673_v2 = vld [vmem:[%s219_s23] sm:$0xff]  ;;  %v3677_v3 = vld [vmem:[%s219_s23 + $0x10] sm:$0xff] }
  0x11   : > { %238 = vrot.lane.b32.xlu0 %v3671_v1, %s3608_s24  ;;  %236 = vrot.lane.b32.xlu1 %v3673_v2, %s3608_s24  ;;  %v715_v4 = vld [vmem:[%s219_s23 + $0x18] sm:$0xff] }
  0x15   : > { %240 = vrot.lane.b32.xlu0 %v3677_v3, %s3608_s24  ;;  %395 = vrot.lane.b32.xlu1 %v3671_v1, %s3609_s25 }
  0x19   : > { %397 = vrot.lane.b32.xlu0 %v3677_v3, %s3609_s25  ;;  %393 = vrot.lane.b32.xlu1 %v3673_v2, %s3609_s25 }
  0x1d   : > { %553 = vrot.lane.b32.xlu0 %v3671_v1, %s3610_s26  ;;  %555 = vrot.lane.b32.xlu1 %v3677_v3, %s3610_s26 }
  0x21   : > { %551 = vrot.lane.b32.xlu0 %v3673_v2, %s3610_s26  ;;  %722 = vrot.lane.b32.xlu1 %v3671_v1, %s3611_s27 }
  0x25   : > { %724 = vrot.lane.b32.xlu0 %v3677_v3, %s3611_s27  ;;  %720 = vrot.lane.b32.xlu1 %v3673_v2, %s3611_s27 }
  0x29   : > { %726 = vrot.lane.b32.xlu0 %v715_v4, %s3611_s27  ;;  %886 = vrot.lane.b32.xlu1 %v3671_v1, %s3612_s28 }
  0x2d   : > { %888 = vrot.lane.b32.xlu0 %v3677_v3, %s3612_s28  ;;  %884 = vrot.lane.b32.xlu1 %v3673_v2, %s3612_s28 }
  0x31   : > { %890 = vrot.lane.b32.xlu0 %v715_v4, %s3612_s28  ;;  %1050 = vrot.lane.b32.xlu1 %v3671_v1, %s3613_s29 }
  0x35   : > { %1052 = vrot.lane.b32.xlu0 %v3677_v3, %s3613_s29  ;;  %1048 = vrot.lane.b32.xlu1 %v3673_v2, %s3613_s29 }
  0x39   : > { %1054 = vrot.lane.b32.xlu0 %v715_v4, %s3613_s29  ;;  %1214 = vrot.lane.b32.xlu1 %v3671_v1, %s3614_s30 }
  0x3d   : > { %1216 = vrot.lane.b32.xlu0 %v3677_v3, %s3614_s30  ;;  %1212 = vrot.lane.b32.xlu1 %v3673_v2, %s3614_s30 }
  0x41   : > { %1218 = vrot.lane.b32.xlu0 %v715_v4, %s3614_s30  ;;  %1378 = vrot.lane.b32.xlu1 %v3671_v1, %s3615_s6 }
  0x45   : > { %1380 = vrot.lane.b32.xlu0 %v3677_v3, %s3615_s6  ;;  %1376 = vrot.lane.b32.xlu1 %v3673_v2, %s3615_s6 }
  0x49   : > { %1382 = vrot.lane.b32.xlu0 %v715_v4, %s3615_s6  ;;  %1542 = vrot.lane.b32.xlu1 %v3671_v1, %s3616_s7 }
  0x4d   : > { %1544 = vrot.lane.b32.xlu0 %v3677_v3, %s3616_s7  ;;  %1540 = vrot.lane.b32.xlu1 %v3673_v2, %s3616_s7 }
  0x51   : > { %1546 = vrot.lane.b32.xlu0 %v715_v4, %s3616_s7 }
  0x83   : > { %v239_v5 = vpop.permute.xlu0 %238  ;;  %v237_v6 = vpop.permute.xlu1 %236 }
  0x84   : > { %v243_v11 = vsel %vm242_vm1, %v237_v6, %v239_v5 }
  0x87   : > { %v241_v8 = vpop.permute.xlu0 %240  ;;  %v396_v9 = vpop.permute.xlu1 %395 }
  0x88   : > { %3415 = vmatpush3.msra.mxu1 %v241_v8  ;;  %v244_v10 = vsel %vm242_vm1, %v239_v5, %v241_v8  ;;  %vm2874_vm1 = vcmask 744448  }
  0x89   : > { %252 = vmatprep.subr.mxu0 %v244_v10  ;;  %3417 = vmatmul.mubr.msk.f32.vlgmr.msra.gmra.mrb[0].mxu1 %vm248_vm2, %v3323_v7  ;;  %v3346_v10 = vld [vmem:[%s3940_s1 + $0x40] sm:$0xff] }
  0x8a   : > { %253 = vmatpush1.msra.mxu0 %v243_v11  ;;  %3419 = vmatprep.subr.mxu1 %v3606_v0  ;;  %v1703_v11 = vlaneseq }
  0x8b   : > { %v398_v12 = vpop.permute.xlu0 %397  ;;  %3324 = vmatmul.mubr.msk.f32.vlgmr.msra.gmra.mrb[0].mxu0 %vm248_vm2, %v3323_v7  ;;  %v394_v13 = vpop.permute.xlu1 %393  ;;  %3421 = vmatprep.mubr.msk.f32.mxu1 %vm3607_vm0, %v3606_v0 }
  0x8c   : > { %v400_v14 = vsel %vm399_vm3, %v394_v13, %v396_v9  ;;  %3420 = vmatpush3.msra.mxu1 %v398_v12  ;;  %v401_v15 = vsel %vm399_vm3, %v396_v9, %v398_v12  ;;  %472 = vmatprep.mubr.f32.mxu0 %v3606_v0  ;;  %v3804_v12 = vshrl.u32 %v1703_v11, 7  ;;  %vm3035_vm3 = vcmask 736256  }
  0x8d   : > { %408 = vmatprep.subr.mxu0 %v401_v15  ;;  %3424 = vmatprep.subr.mxu1 %v3606_v0  ;;  %v225_v15 = vld [vmem:[%s3942_s3] sm:$0x7] }
  0x8e   : > { %409 = vmatpush1.msra.mxu0 %v400_v14  ;;  %v1713_v13 = vsub.s32 2, %v3804_v12  ;;  %v1705_v14 = vsub.s32 0, %v3804_v12 }
  0x8f   : > { %v554_v17 = vpop.permute.xlu0 %553  ;;  %v556_v18 = vpop.permute.xlu1 %555 }
  0x90   : > { %v559_v19 = vsel %vm557_vm4, %v554_v17, %v556_v18 }
  0x91   : > { %3422 = vmatmul.mubr.msk.f32.vlgmr.msra.gmra.mrb[0].mxu1 %vm248_vm2, %v227_v16  ;;  %566 = vmatprep.subr.mxu0 %v559_v19 }
  0x92   : > { %3425 = vmatpush3.msra.mxu1 %v556_v18  ;;  %3426 = vmatprep.mubr.msk.f32.mxu1 %vm3607_vm0, %v3606_v0  ;;  %v1706_v18 = vrot.slane %v225_v15, %v1705_v14 }
  0x93   : > { %v552_v20 = vpop.permute.xlu0 %551  ;;  %3326 = vmatmul.mubr.msk.f32.vlgmr.msra.gmra.mrb[0].mxu0 %vm248_vm2, %v227_v16  ;;  %v723_v21 = vpop.permute.xlu1 %722  ;;  %3429 = vmatprep.subr.mxu1 %v3606_v0  ;;  %v1709_v16 = vsub.s32 1, %v3804_v12 }
  0x94   : > { %v558_v22 = vsel %vm557_vm4, %v552_v20, %v554_v17  ;;  %630 = vmatprep.mubr.f32.mxu0 %v3606_v0  ;;  %v1714_v17 = vrot.slane %v225_v15, %v1713_v13 }
  0x95   : > { %567 = vmatpush1.msra.mxu0 %v558_v22  ;;  %v1710_v20 = vrot.slane %v225_v15, %v1709_v16 }
  0x97   : > { %v725_v24 = vpop.permute.xlu0 %724  ;;  %v721_v25 = vpop.permute.xlu1 %720 }
  0x98   : > { %v730_v26 = vsel %vm728_vm5, %v723_v21, %v725_v24  ;;  %v729_v27 = vsel %vm728_vm5, %v721_v25, %v723_v21 }
  0x99   : > { %3427 = vmatmul.mubr.msk.f32.vlgmr.msra.gmra.mrb[0].mxu1 %vm248_vm2, %v3328_v23  ;;  %738 = vmatprep.subr.mxu0 %v730_v26 }
  0x9a   : > { %3431 = vmatprep.mubr.msk.f32.mxu1 %vm3607_vm0, %v3606_v0 }
  0x9b   : > { %v727_v28 = vpop.permute.xlu0 %726  ;;  %3329 = vmatmul.mubr.msk.f32.vlgmr.msra.gmra.mrb[0].mxu0 %vm248_vm2, %v3328_v23  ;;  %v887_v29 = vpop.permute.xlu1 %886 }
  0x9c   : > { %v731_v30 = vsel %vm728_vm5, %v725_v24, %v727_v28  ;;  %739 = vmatpush1.msra.mxu0 %v729_v27  ;;  %802 = vmatprep.mubr.f32.mxu0 %v3606_v0 }
  0x9d   : > { %3430 = vmatpush3.msra.mxu1 %v731_v30 }
  0x9e   : > { %3434 = vmatprep.subr.mxu1 %v3606_v0 }
  0x9f   : > { %v889_v32 = vpop.permute.xlu0 %888  ;;  %v885_v33 = vpop.permute.xlu1 %884 }
  0xa0   : > { %v894_v34 = vsel %vm892_vm6, %v887_v29, %v889_v32  ;;  %v893_v35 = vsel %vm892_vm6, %v885_v33, %v887_v29 }
  0xa1   : > { %3432 = vmatmul.mubr.msk.f32.vlgmr.msra.gmra.mrb[0].mxu1 %vm248_vm2, %v3331_v31  ;;  %902 = vmatprep.subr.mxu0 %v894_v34 }
  0xa2   : > { %3436 = vmatprep.mubr.msk.f32.mxu1 %vm3607_vm0, %v3606_v0 }
  0xa3   : > { %v891_v36 = vpop.permute.xlu0 %890  ;;  %3332 = vmatmul.mubr.msk.f32.vlgmr.msra.gmra.mrb[0].mxu0 %vm248_vm2, %v3331_v31  ;;  %v1051_v37 = vpop.permute.xlu1 %1050 }
  0xa4   : > { %v895_v38 = vsel %vm892_vm6, %v889_v32, %v891_v36  ;;  %903 = vmatpush1.msra.mxu0 %v893_v35  ;;  %966 = vmatprep.mubr.f32.mxu0 %v3606_v0 }
  0xa5   : > { %3435 = vmatpush3.msra.mxu1 %v895_v38 }
  0xa6   : > { %3439 = vmatprep.subr.mxu1 %v3606_v0 }
  0xa7   : > { %v1053_v40 = vpop.permute.xlu0 %1052  ;;  %v1049_v41 = vpop.permute.xlu1 %1048 }
  0xa8   : > { %v1058_v42 = vsel %vm1056_vm7, %v1051_v37, %v1053_v40  ;;  %v1057_v43 = vsel %vm1056_vm7, %v1049_v41, %v1051_v37 }
  0xa9   : > { %3437 = vmatmul.mubr.msk.f32.vlgmr.msra.gmra.mrb[0].mxu1 %vm248_vm2, %v3334_v39  ;;  %1066 = vmatprep.subr.mxu0 %v1058_v42 }
  0xaa   : > { %3441 = vmatprep.mubr.msk.f32.mxu1 %vm3607_vm0, %v3606_v0 }
  0xab   : > { %v1055_v44 = vpop.permute.xlu0 %1054  ;;  %3335 = vmatmul.mubr.msk.f32.vlgmr.msra.gmra.mrb[0].mxu0 %vm248_vm2, %v3334_v39  ;;  %v1215_v45 = vpop.permute.xlu1 %1214 }
  0xac   : > { %v1059_v46 = vsel %vm1056_vm7, %v1053_v40, %v1055_v44  ;;  %1067 = vmatpush1.msra.mxu0 %v1057_v43  ;;  %1130 = vmatprep.mubr.f32.mxu0 %v3606_v0 }
  0xad   : > { %3440 = vmatpush3.msra.mxu1 %v1059_v46 }
  0xae   : > { %3444 = vmatprep.subr.mxu1 %v3606_v0 }
  0xaf   : > { %v1217_v48 = vpop.permute.xlu0 %1216  ;;  %v1213_v49 = vpop.permute.xlu1 %1212 }
  0xb0   : > { %v1222_v50 = vsel %vm1220_vm8, %v1215_v45, %v1217_v48  ;;  %v1221_v51 = vsel %vm1220_vm8, %v1213_v49, %v1215_v45 }
  0xb1   : > { %3442 = vmatmul.mubr.msk.f32.vlgmr.msra.gmra.mrb[0].mxu1 %vm248_vm2, %v3337_v47  ;;  %1230 = vmatprep.subr.mxu0 %v1222_v50 }
  0xb2   : > { %3446 = vmatprep.mubr.msk.f32.mxu1 %vm3607_vm0, %v3606_v0 }
  0xb3   : > { %v1219_v52 = vpop.permute.xlu0 %1218  ;;  %3338 = vmatmul.mubr.msk.f32.vlgmr.msra.gmra.mrb[0].mxu0 %vm248_vm2, %v3337_v47  ;;  %v1379_v53 = vpop.permute.xlu1 %1378 }
  0xb4   : > { %v1223_v54 = vsel %vm1220_vm8, %v1217_v48, %v1219_v52  ;;  %1231 = vmatpush1.msra.mxu0 %v1221_v51  ;;  %1294 = vmatprep.mubr.f32.mxu0 %v3606_v0 }
  0xb5   : > { %3445 = vmatpush3.msra.mxu1 %v1223_v54 }
  0xb6   : > { %3449 = vmatprep.subr.mxu1 %v3606_v0 }
  0xb7   : > { %v1381_v56 = vpop.permute.xlu0 %1380  ;;  %v1377_v57 = vpop.permute.xlu1 %1376 }
  0xb8   : > { %v1386_v58 = vsel %vm1384_vm9, %v1379_v53, %v1381_v56  ;;  %v1385_v59 = vsel %vm1384_vm9, %v1377_v57, %v1379_v53 }
  0xb9   : > { %3447 = vmatmul.mubr.msk.f32.vlgmr.msra.gmra.mrb[0].mxu1 %vm248_vm2, %v3340_v55  ;;  %1394 = vmatprep.subr.mxu0 %v1386_v58 }
  0xba   : > { %3451 = vmatprep.mubr.msk.f32.mxu1 %vm3607_vm0, %v3606_v0 }
  0xbb   : > { %v1383_v60 = vpop.permute.xlu0 %1382  ;;  %3341 = vmatmul.mubr.msk.f32.vlgmr.msra.gmra.mrb[0].mxu0 %vm248_vm2, %v3340_v55  ;;  %v1543_v61 = vpop.permute.xlu1 %1542 }
  0xbc   : > { %v1387_v62 = vsel %vm1384_vm9, %v1381_v56, %v1383_v60  ;;  %1395 = vmatpush1.msra.mxu0 %v1385_v59  ;;  %1458 = vmatprep.mubr.f32.mxu0 %v3606_v0  ;;  %v3349_v56 = vld [vmem:[%s3941_s2 + $0x8] sm:$0xff] }
  0xbd   : > { %3450 = vmatpush3.msra.mxu1 %v1387_v62 }
  0xbe   : > { %3454 = vmatprep.subr.mxu1 %v3606_v0 }
  0xbf   : > { %v1545_v4 = vpop.permute.xlu0 %1544  ;;  %v1541_v5 = vpop.permute.xlu1 %1540 }
  0xc0   : > { %v1550_v6 = vsel %vm1548_vm10, %v1543_v61, %v1545_v4  ;;  %v1549_v7 = vsel %vm1548_vm10, %v1541_v5, %v1543_v61 }
  0xc1   : > { %3452 = vmatmul.mubr.msk.f32.vlgmr.msra.gmra.mrb[0].mxu1 %vm248_vm2, %v3343_v63  ;;  %1558 = vmatprep.subr.mxu0 %v1550_v6 }
  0xc2   : > { %3456 = vmatprep.mubr.msk.f32.mxu1 %vm3607_vm0, %v3606_v0 }
  0xc3   : > { %v1547_v8 = vpop.permute.xlu0 %1546  ;;  %3344 = vmatmul.mubr.msk.f32.vlgmr.msra.gmra.mrb[0].mxu0 %vm248_vm2, %v3343_v63  ;;  %v1754_v63 = vld [vmem:[%s3941_s2] sm:$0xff] }
  0xc4   : > { %v1551_v9 = vsel %vm1548_vm10, %v1545_v4, %v1547_v8  ;;  %1559 = vmatpush1.msra.mxu0 %v1549_v7  ;;  %1622 = vmatprep.mubr.f32.mxu0 %v3606_v0 }
  0xc5   : > { %3455 = vmatpush3.msra.mxu1 %v1551_v9  ;;  %v3354_v9 = vld [vmem:[%s3941_s2 + $0x10] sm:$0xff] }
  0xc6   : > { %3459 = vmatprep.subr.mxu1 %v3606_v0 }
  0xc9   : > { %3457 = vmatmul.mubr.msk.f32.vlgmr.msra.gmra.mrb[0].mxu1 %vm248_vm2, %v3346_v10 }
  0xca   : > { %3461 = vmatprep.mubr.msk.f32.mxu1 %vm3607_vm0, %v3606_v0 }
  0xcb   : > { %3347 = vmatmul.mubr.msk.f32.vlgmr.msra.gmra.mrb[0].mxu0 %vm248_vm2, %v3346_v10 }
  0xcc   : > { %1842 = vmatprep.mubr.f32.mxu0 %v3606_v0 }
 0x19c   : > { %v1695_v19 = vpop.f32.mrb[0].mxu1 }
 0x19d   : > { %v3458_v21 = vpop.f32.mrb[1].mxu1  ;;  %v1720_v23 = vmul.f32 %v1714_v17, %v1695_v19 }
 0x19e   : > { %v1624_v22 = vpop.f32.mrb[0].mxu0 }
 0x19f   : > { %v1718_v24 = vmul.f32 %v1706_v18, %v1624_v22  ;;  %v1626_v25 = vpop.f32.mrb[1].mxu0  ;;  %v1723_v28 = vsel %vm1722_vm11, %v1720_v23, 0.0 }
 0x1a0   : > { %v1719_v26 = vmul.f32 %v1710_v20, %v1626_v25 }
 0x1a2   : > { %v1721_v27 = vadd.f32 %v1719_v26, %v1718_v24  ;;  %v3360_v26 = vld [vmem:[%s3941_s2 + $0x20] sm:$0xff] }
 0x1a4   : > { %v1724_v29 = vadd.f32 %v1723_v28, %v1721_v27 }
 0x1a6   : > { %1725 = vadd.xlane.f32.xlu1 %v1724_v29 }
 0x233   : > { %v1726_v30 = vpop.xlane.xlu1 %1725 }
 0x234   : > { %v1727_v31 = vmul.f32 0.00390625, %v1726_v30 }
 0x236   : > { %v1728_v32 = vsub.f32 %v1624_v22, %v1727_v31  ;;  %v1729_v33 = vsub.f32 %v1626_v25, %v1727_v31  ;;  %v1730_v34 = vsub.f32 %v1695_v19, %v1727_v31  ;;  %v3363_v31 = vld [vmem:[%s3941_s2 + $0x28] sm:$0xff] }
 0x238   : > { %v1731_v35 = vmul.f32 %v1728_v32, %v1706_v18  ;;  %v1732_v36 = vmul.f32 %v1729_v33, %v1710_v20  ;;  %v1733_v37 = vmul.f32 %v1730_v34, %v1714_v17  ;;  %v3357_v20 = vld [vmem:[%s3941_s2 + $0x18] sm:$0xff] }
 0x23a   : > { %v1734_v38 = vmul.f32 %v1731_v35, %v1731_v35  ;;  %v1735_v39 = vmul.f32 %v1732_v36, %v1732_v36  ;;  %v1736_v40 = vmul.f32 %v1733_v37, %v1733_v37  ;;  %v1745_v47 = vmax.f32 %v1731_v35, 0.0 }
 0x23b   : > { %v1746_v48 = vmax.f32 %v1732_v36, 0.0  ;;  %v1747_v49 = vmax.f32 %v1733_v37, 0.0 }
 0x23c   : > { %v1737_v41 = vadd.f32 %v1735_v39, %v1734_v38  ;;  %v1738_v42 = vsel %vm1722_vm11, %v1736_v40, 0.0  ;;  %v3366_v38 = vld [vmem:[%s3941_s2 + $0x30] sm:$0xff] }
 0x23e   : > { %v1739_v43 = vadd.f32 %v1738_v42, %v1737_v41 }
 0x240   : > { %1740 = vadd.xlane.f32.xlu0 %v1739_v43  ;;  %v3369_v43 = vld [vmem:[%s3941_s2 + $0x38] sm:$0xff] }
 0x2cd   : > { %v1741_v44 = vpop.xlane.xlu0 %1740 }
 0x2ce   : > { %v1742_v45 = vmul.f32 0.00390625, %v1741_v44 }
 0x2d0   : > { %v1743_v46 = vadd.f32 1e-05, %v1742_v45 }
 0x2d2   : > { %3594 = vrsqrt.f32 %v1743_v46 }
 0x2dc   : > { %v3595_v50 = vpop.eup %3594 }
 0x2dd   : > { %v1748_v51 = vmul.f32 %v3595_v50, %v1745_v47  ;;  %v1749_v52 = vmul.f32 %v3595_v50, %v1746_v48  ;;  %v1750_v53 = vmul.f32 %v3595_v50, %v1747_v49  ;;  %v3372_v47 = vld [vmem:[%s3941_s2 + $0x40] sm:$0xff] }
 0x2de   : > { %v226_v48 = vld [vmem:[%s3943_s4] sm:$0x7] }
 0x2df   : > { %1753 = vst.msk [vmem:[#allocation2 + $0x10] sm:$0xff] %vm1722_vm11, %v1750_v53  ;;  %1765 = vrot.lane.b32.xlu0 %v1749_v52, %s3617_s8  ;;  %v3196_v53 = vrot.slane %v226_v48, %v1709_v16 }
 0x2e3   : > { %2067 = vrot.lane.b32.xlu0 %v1749_v52, %s3618_s9 }
 0x2e6   : > { %v1757_v54 = vld [vmem:[#allocation2 + $0x10] sm:$0xff] }
 0x2e7   : > { %1767 = vrot.lane.b32.xlu1 %v1757_v54, %s3617_s8  ;;  %2065 = vrot.lane.b32.xlu0 %v1748_v51, %s3618_s9 }
 0x2eb   : > { %1763 = vrot.lane.b32.xlu1 %v1748_v51, %s3617_s8  ;;  %2230 = vrot.lane.b32.xlu0 %v1757_v54, %s3610_s26 }
 0x2ef   : > { %2069 = vrot.lane.b32.xlu1 %v1757_v54, %s3618_s9  ;;  %2388 = vrot.lane.b32.xlu0 %v1749_v52, %s3619_s10 }
 0x2f3   : > { %2228 = vrot.lane.b32.xlu1 %v1749_v52, %s3610_s26  ;;  %2386 = vrot.lane.b32.xlu0 %v1748_v51, %s3619_s10 }
 0x2f7   : > { %2226 = vrot.lane.b32.xlu1 %v1748_v51, %s3610_s26  ;;  %2551 = vrot.lane.b32.xlu0 %v1757_v54, %s3620_s11 }
 0x2fb   : > { %2390 = vrot.lane.b32.xlu1 %v1757_v54, %s3619_s10  ;;  %2710 = vrot.lane.b32.xlu0 %v1749_v52, %s3613_s29 }
 0x2ff   : > { %2549 = vrot.lane.b32.xlu1 %v1749_v52, %s3620_s11  ;;  %2708 = vrot.lane.b32.xlu0 %v1748_v51, %s3613_s29 }
 0x303   : > { %2547 = vrot.lane.b32.xlu1 %v1748_v51, %s3620_s11  ;;  %2872 = vrot.lane.b32.xlu0 %v1757_v54, %s3621_s12 }
 0x307   : > { %2712 = vrot.lane.b32.xlu1 %v1757_v54, %s3613_s29  ;;  %3031 = vrot.lane.b32.xlu0 %v1749_v52, %s3622_s13 }
 0x30b   : > { %2870 = vrot.lane.b32.xlu1 %v1749_v52, %s3621_s12  ;;  %3029 = vrot.lane.b32.xlu0 %v1748_v51, %s3622_s13 }
 0x30f   : > { %2868 = vrot.lane.b32.xlu1 %v1748_v51, %s3621_s12  ;;  %s3568_s12 = smul.u32 24, %s3946_s19 }
 0x311   : > { %s224_s26 = scalar_lea.vmem %s3944_s5, %s3568_s12 }
 0x313   : > { %3033 = vrot.lane.b32.xlu1 %v1757_v54, %s3622_s13 }
 0x351   : > { %v1766_v55 = vpop.permute.xlu0 %1765 }
 0x355   : > { %v2068_v57 = vpop.permute.xlu0 %2067 }
 0x359   : > { %v1768_v58 = vpop.permute.xlu1 %1767  ;;  %v2066_v62 = vpop.permute.xlu0 %2065 }
 0x35a   : > { %3460 = vmatpush3.msra.mxu1 %v1768_v58  ;;  %v1771_v59 = vsel %vm1769_vm12, %v1766_v55, %v1768_v58  ;;  %v2072_v8 = vsel %vm2071_vm13, %v2066_v62, %v2068_v57 }
 0x35b   : > { %1778 = vmatprep.subr.mxu0 %v1771_v59  ;;  %3462 = vmatmul.mubr.msk.f32.vlgmr.msra.gmra.mrb[2].mxu1 %vm248_vm2, %v3349_v56 }
 0x35c   : > { %3464 = vmatprep.subr.mxu1 %v3606_v0  ;;  %3466 = vmatprep.mubr.msk.f32.mxu1 %vm3607_vm0, %v3606_v0 }
 0x35d   : > { %3465 = vmatpush3.msra.mxu1 %v1757_v54  ;;  %v1764_v60 = vpop.permute.xlu1 %1763  ;;  %v2231_v6 = vpop.permute.xlu0 %2230 }
 0x35e   : > { %v1770_v61 = vsel %vm1769_vm12, %v1764_v60, %v1766_v55  ;;  %3469 = vmatprep.subr.mxu1 %v3606_v0 }
 0x35f   : > { %1779 = vmatpush1.msra.mxu0 %v1770_v61 }
 0x360   : > { %3350 = vmatmul.mubr.msk.f32.vlgmr.msra.gmra.mrb[2].mxu0 %vm248_vm2, %v3349_v56  ;;  %1922 = vmatprep.subr.mxu0 %v1749_v52  ;;  %v3192_v52 = vrot.slane %v226_v48, %v1705_v14 }
 0x361   : > { %1923 = vmatpush1.msra.mxu0 %v1748_v51  ;;  %v2070_v4 = vpop.permute.xlu1 %2069  ;;  %1986 = vmatprep.mubr.f32.mxu0 %v3606_v0  ;;  %v2389_v15 = vpop.permute.xlu0 %2388  ;;  %v3200_v51 = vrot.slane %v226_v48, %v1713_v13 }
 0x362   : > { %v2073_v5 = vsel %vm2071_vm13, %v2068_v57, %v2070_v4 }
 0x363   : > { %3467 = vmatmul.mubr.msk.f32.vlgmr.msra.gmra.mrb[2].mxu1 %vm248_vm2, %v1754_v63  ;;  %2080 = vmatprep.subr.mxu0 %v2073_v5 }
 0x364   : > { %3470 = vmatpush3.msra.mxu1 %v2070_v4  ;;  %3471 = vmatprep.mubr.msk.f32.mxu1 %vm3607_vm0, %v3606_v0 }
 0x365   : > { %v2229_v7 = vpop.permute.xlu1 %2228  ;;  %3474 = vmatprep.subr.mxu1 %v3606_v0  ;;  %v2387_v19 = vpop.permute.xlu0 %2386 }
 0x366   : > { %v2233_v10 = vsel %vm557_vm4, %v2229_v7, %v2231_v6  ;;  %v2393_v25 = vsel %vm2392_vm14, %v2387_v19, %v2389_v15 }
 0x368   : > { %3352 = vmatmul.mubr.msk.f32.vlgmr.msra.gmra.mrb[2].mxu0 %vm248_vm2, %v1754_v63 }
 0x369   : > { %2081 = vmatpush1.msra.mxu0 %v2072_v8  ;;  %v2227_v11 = vpop.permute.xlu1 %2226  ;;  %2144 = vmatprep.mubr.f32.mxu0 %v3606_v0  ;;  %v2552_v23 = vpop.permute.xlu0 %2551 }
 0x36a   : > { %2240 = vmatprep.subr.mxu0 %v2233_v10  ;;  %v2232_v18 = vsel %vm557_vm4, %v2227_v11, %v2229_v7 }
 0x36b   : > { %3472 = vmatmul.mubr.msk.f32.vlgmr.msra.gmra.mrb[2].mxu1 %vm248_vm2, %v3354_v9 }
 0x36c   : > { %3475 = vmatpush3.msra.mxu1 %v2231_v6  ;;  %3476 = vmatprep.mubr.msk.f32.mxu1 %vm3607_vm0, %v3606_v0 }
 0x36d   : > { %v2391_v17 = vpop.permute.xlu1 %2390  ;;  %3479 = vmatprep.subr.mxu1 %v3606_v0  ;;  %v2711_v28 = vpop.permute.xlu0 %2710 }
 0x36e   : > { %v2394_v21 = vsel %vm2392_vm14, %v2389_v15, %v2391_v17 }
 0x370   : > { %3355 = vmatmul.mubr.msk.f32.vlgmr.msra.gmra.mrb[2].mxu0 %vm248_vm2, %v3354_v9 }
 0x371   : > { %2241 = vmatpush1.msra.mxu0 %v2232_v18  ;;  %v2550_v22 = vpop.permute.xlu1 %2549  ;;  %2304 = vmatprep.mubr.f32.mxu0 %v3606_v0  ;;  %v2709_v33 = vpop.permute.xlu0 %2708 }
 0x372   : > { %2401 = vmatprep.subr.mxu0 %v2394_v21  ;;  %v2555_v27 = vsel %vm2553_vm15, %v2550_v22, %v2552_v23  ;;  %v2714_v35 = vsel %vm1056_vm7, %v2709_v33, %v2711_v28 }
 0x373   : > { %3477 = vmatmul.mubr.msk.f32.vlgmr.msra.gmra.mrb[2].mxu1 %vm248_vm2, %v3357_v20 }
 0x374   : > { %3480 = vmatpush3.msra.mxu1 %v2391_v17  ;;  %3481 = vmatprep.mubr.msk.f32.mxu1 %vm3607_vm0, %v3606_v0 }
 0x375   : > { %3484 = vmatprep.subr.mxu1 %v3606_v0  ;;  %v2548_v24 = vpop.permute.xlu1 %2547  ;;  %v2873_v36 = vpop.permute.xlu0 %2872 }
 0x376   : > { %v2554_v30 = vsel %vm2553_vm15, %v2548_v24, %v2550_v22 }
 0x378   : > { %3358 = vmatmul.mubr.msk.f32.vlgmr.msra.gmra.mrb[2].mxu0 %vm248_vm2, %v3357_v20 }
 0x379   : > { %2402 = vmatpush1.msra.mxu0 %v2393_v25  ;;  %2465 = vmatprep.mubr.f32.mxu0 %v3606_v0  ;;  %v2713_v29 = vpop.permute.xlu1 %2712  ;;  %v3032_v41 = vpop.permute.xlu0 %3031 }
 0x37a   : > { %2562 = vmatprep.subr.mxu0 %v2555_v27  ;;  %v2715_v32 = vsel %vm1056_vm7, %v2711_v28, %v2713_v29 }
 0x37b   : > { %3482 = vmatmul.mubr.msk.f32.vlgmr.msra.gmra.mrb[2].mxu1 %vm248_vm2, %v3360_v26 }
 0x37c   : > { %3485 = vmatpush3.msra.mxu1 %v2552_v23  ;;  %3486 = vmatprep.mubr.msk.f32.mxu1 %vm3607_vm0, %v3606_v0 }
 0x37d   : > { %3489 = vmatprep.subr.mxu1 %v3606_v0  ;;  %v2871_v34 = vpop.permute.xlu1 %2870  ;;  %v3030_v45 = vpop.permute.xlu0 %3029 }
 0x37e   : > { %v2876_v39 = vsel %vm2874_vm1, %v2871_v34, %v2873_v36  ;;  %v3036_v46 = vsel %vm3035_vm3, %v3030_v45, %v3032_v41 }
 0x380   : > { %3361 = vmatmul.mubr.msk.f32.vlgmr.msra.gmra.mrb[2].mxu0 %vm248_vm2, %v3360_v26 }
 0x381   : > { %2563 = vmatpush1.msra.mxu0 %v2554_v30  ;;  %2626 = vmatprep.mubr.f32.mxu0 %v3606_v0  ;;  %v2869_v37 = vpop.permute.xlu1 %2868 }
 0x382   : > { %2722 = vmatprep.subr.mxu0 %v2715_v32  ;;  %v2875_v42 = vsel %vm2874_vm1, %v2869_v37, %v2871_v34 }
 0x383   : > { %3487 = vmatmul.mubr.msk.f32.vlgmr.msra.gmra.mrb[2].mxu1 %vm248_vm2, %v3363_v31 }
 0x384   : > { %3490 = vmatpush3.msra.mxu1 %v2713_v29  ;;  %3491 = vmatprep.mubr.msk.f32.mxu1 %vm3607_vm0, %v3606_v0 }
 0x385   : > { %3494 = vmatprep.subr.mxu1 %v3606_v0  ;;  %v3034_v40 = vpop.permute.xlu1 %3033 }
 0x386   : > { %v3037_v44 = vsel %vm3035_vm3, %v3032_v41, %v3034_v40 }
 0x388   : > { %3364 = vmatmul.mubr.msk.f32.vlgmr.msra.gmra.mrb[2].mxu0 %vm248_vm2, %v3363_v31 }
 0x389   : > { %2723 = vmatpush1.msra.mxu0 %v2714_v35  ;;  %2786 = vmatprep.mubr.f32.mxu0 %v3606_v0 }
 0x38a   : > { %2883 = vmatprep.subr.mxu0 %v2876_v39 }
 0x38b   : > { %3492 = vmatmul.mubr.msk.f32.vlgmr.msra.gmra.mrb[2].mxu1 %vm248_vm2, %v3366_v38 }
 0x38c   : > { %3495 = vmatpush3.msra.mxu1 %v2873_v36  ;;  %3496 = vmatprep.mubr.msk.f32.mxu1 %vm3607_vm0, %v3606_v0 }
 0x38d   : > { %3499 = vmatprep.subr.mxu1 %v3606_v0 }
 0x390   : > { %3367 = vmatmul.mubr.msk.f32.vlgmr.msra.gmra.mrb[2].mxu0 %vm248_vm2, %v3366_v38 }
 0x391   : > { %2884 = vmatpush1.msra.mxu0 %v2875_v42  ;;  %2947 = vmatprep.mubr.f32.mxu0 %v3606_v0 }
 0x392   : > { %3044 = vmatprep.subr.mxu0 %v3037_v44 }
 0x393   : > { %3497 = vmatmul.mubr.msk.f32.vlgmr.msra.gmra.mrb[2].mxu1 %vm248_vm2, %v3369_v43 }
 0x394   : > { %3500 = vmatpush3.msra.mxu1 %v3034_v40  ;;  %3501 = vmatprep.mubr.msk.f32.mxu1 %vm3607_vm0, %v3606_v0  ;;  %vm3208_vm0 = vcmask 556032  }
 0x398   : > { %3370 = vmatmul.mubr.msk.f32.vlgmr.msra.gmra.mrb[2].mxu0 %vm248_vm2, %v3369_v43 }
 0x399   : > { %3045 = vmatpush1.msra.mxu0 %v3036_v46  ;;  %3108 = vmatprep.mubr.f32.mxu0 %v3606_v0 }
 0x39b   : > { %3502 = vmatmul.mubr.msk.f32.vlgmr.msra.gmra.mrb[2].mxu1 %vm248_vm2, %v3372_v47 }
 0x3a0   : > { %3373 = vmatmul.mubr.msk.f32.vlgmr.msra.gmra.mrb[2].mxu0 %vm248_vm2, %v3372_v47 }
 0x46e   : > { %v3181_v49 = vpop.f32.mrb[2].mxu1 }
 0x46f   : > { %v3503_v50 = vpop.f32.mrb[3].mxu1  ;;  %v3206_v54 = vmul.f32 %v3200_v51, %v3181_v49 }
 0x471   : > { %v3209_v59 = vsel %vm3208_vm0, %v3206_v54, 0.0 }
 0x473   : > { %v3110_v0 = vpop.f32.mrb[2].mxu0 }
 0x474   : > { %v3204_v55 = vmul.f32 %v3192_v52, %v3110_v0  ;;  %v3112_v56 = vpop.f32.mrb[3].mxu0 }
 0x475   : > { %v3205_v57 = vmul.f32 %v3196_v53, %v3112_v56 }
 0x477   : > { %v3207_v58 = vadd.f32 %v3205_v57, %v3204_v55 }
 0x479   : > { %v3210_v60 = vadd.f32 %v3209_v59, %v3207_v58 }
 0x47b   : > { %3211 = vadd.xlane.f32.xlu1 %v3210_v60 }
 0x48c   : > { %3242 = vrot.lane.b32.xlu1 %v3671_v1, %s3616_s7 }
 0x490   : > { %3244 = vrot.lane.b32.xlu1 %v3677_v3, %s3616_s7 }
 0x508   : > { %v3212_v13 = vpop.xlane.xlu1 %3211 }
 0x509   : > { %v3213_v12 = vmul.f32 0.00390625, %v3212_v13 }
 0x50b   : > { %v3214_v14 = vsub.f32 %v3110_v0, %v3213_v12  ;;  %v3215_v16 = vsub.f32 %v3112_v56, %v3213_v12  ;;  %v3216_v61 = vsub.f32 %v3181_v49, %v3213_v12 }
 0x50c   : > { %v3243_v15 = vpop.permute.xlu1 %3242 }
 0x50d   : > { %v3217_v62 = vmul.f32 %v3214_v14, %v3192_v52  ;;  %v3218_v63 = vmul.f32 %v3215_v16, %v3196_v53  ;;  %v3219_v4 = vmul.f32 %v3216_v61, %v3200_v51 }
 0x50f   : > { %v3220_v5 = vmul.f32 %v3217_v62, %v3217_v62  ;;  %v3221_v6 = vmul.f32 %v3218_v63, %v3218_v63  ;;  %v3222_v7 = vmul.f32 %v3219_v4, %v3219_v4 }
 0x510   : > { %v3245_v18 = vpop.permute.xlu1 %3244 }
 0x511   : > { %v3223_v8 = vadd.f32 %v3221_v6, %v3220_v5  ;;  %v3224_v9 = vsel %vm3208_vm0, %v3222_v7, 0.0  ;;  %v3247_v24 = vsel %vm1548_vm10, %v3243_v15, %v3245_v18 }
 0x513   : > { %v3225_v10 = vadd.f32 %v3224_v9, %v3223_v8 }
 0x515   : > { %3226 = vadd.xlane.f32.xlu0 %v3225_v10 }
 0x52b   : > { %3240 = vrot.lane.b32.xlu0 %v3673_v2, %s3616_s7 }
 0x5a2   : > { %v3227_v1 = vpop.xlane.xlu0 %3226 }
 0x5a3   : > { %v3228_v3 = vmul.f32 0.00390625, %v3227_v1 }
 0x5a5   : > { %v3229_v11 = vadd.f32 1e-05, %v3228_v3 }
 0x5a6   : > { %v3241_v17 = vpop.permute.xlu0 %3240 }
 0x5a7   : > { %3596 = vrsqrt.f32 %v3229_v11  ;;  %v3246_v23 = vsel %vm1548_vm10, %v3241_v17, %v3243_v15 }
 0x5b1   : > { %v3597_v19 = vpop.eup %3596 }
 0x5b2   : > { %v3234_v20 = vmul.f32 %v3597_v19, %v3217_v62  ;;  %v3235_v21 = vmul.f32 %v3597_v19, %v3218_v63  ;;  %v3236_v22 = vmul.f32 %v3597_v19, %v3219_v4 }
 0x5b4   : > { %v3251_v25 = vadd.f32 %v3246_v23, %v3234_v20  ;;  %v3252_v26 = vadd.f32 %v3247_v24, %v3235_v21  ;;  %v3253_v27 = vadd.f32 %v3245_v18, %v3236_v22 }
 0x5b6   : > { %v3254_v2 = vmax.f32 %v3251_v25, 0.0  ;;  %v3255_v28 = vmax.f32 %v3252_v26, 0.0  ;;  %v3256_v29 = vmax.f32 %v3253_v27, 0.0 }
 0x5b8   : > { %3257 = vst [vmem:[%s224_s26] sm:$0xff] %v3254_v2  ;;  %3258 = vst [vmem:[%s224_s26 + $0x8] sm:$0xff] %v3255_v28 }
 0x5b9   : > { %3259 = vst.msk [vmem:[%s224_s26 + $0x10] sm:$0xff] %vm3208_vm0, %v3256_v29 }
 0x5ba PF: > { %s15_s18 = sadd.s32 1, %s3604_s18  }
 0x5bb   : > { %p12_p4 = scmp.ge.s32.totalorder %s15_s18, 4  }
 0x5bd   :  { %14 = sbr.rel (!%p12_p4) target bundleno = 1 (0x1), region = 86 }

</bundles_post_ra>
